<compile_context>
chip_gen: v7x
topology: tpu7x:2x2x1
jax: 0.10.0
libtpu: 0.0.40
codegen_flags: <defaults>
</compile_context>

<pallas_src>
import jax
import jax.numpy as jnp
from jax.experimental import pallas as pl
from jax.experimental.pallas import tpu as pltpu

IN_DIM = 8 * 12   # 96
H1 = 128
H2 = 64
OUT_DIM = 13

TB_MAX = 1024     # batch tile upper bound (~85% of HBM roofline territory)
TB_SPLIT = 256    # if B >= 2*TB_SPLIT, use >=2 tiles so v7x's 2nd TC gets work


def _cdiv(a, b):
    return -(-a // b)


def _round_up(n, m):
    return ((n + m - 1) // m) * m


def _choose_batch_tiling(B):
    """Pick (tile, padded_B, num_tiles): equalized tiles, <8 rows of padding,
    and an even multi-step grid for large B (v7x megacore)."""
    n_tiles = _cdiv(B, TB_MAX)
    if n_tiles == 1 and B >= 2 * TB_SPLIT:
        n_tiles = 2                       # let both v7x TensorCores work
    if n_tiles > 1 and n_tiles % 2 == 1:
        n_tiles += 1                      # even split across 2 TCs
    tb = _round_up(_cdiv(B, n_tiles), 8)  # sublane-aligned
    return tb, tb * n_tiles, n_tiles


def mlp_kernel(x_ref, w1_ref, b1_ref, w2_ref, b2_ref, w3_ref, b3_ref, o_ref):
    # hidden1 + ReLU (f32 operands, f32 MXU accumulation)
    h1 = jnp.dot(x_ref[...], w1_ref[...], preferred_element_type=jnp.float32)
    h1 = jnp.maximum(h1 + b1_ref[...], 0.0)
    # hidden2 + ReLU
    h2 = jnp.dot(h1, w2_ref[...], preferred_element_type=jnp.float32)
    h2 = jnp.maximum(h2 + b2_ref[...], 0.0)
    # output layer (no activation); narrow (tb, 13) store
    out = jnp.dot(h2, w3_ref[...], preferred_element_type=jnp.float32)
    o_ref[...] = (out + b3_ref[...]).astype(o_ref.dtype)


def mlp_forward(x, w1, b1, w2, b2, w3, b3):
    B = x.shape[0]
    tb, Bp, n_tiles = _choose_batch_tiling(B)

    # Only batch padding (<8 rows unless B < 8); no lane padding, no casts.
    x_p = x if Bp == B else jnp.pad(x, ((0, Bp - B), (0, 0)))

    # Weights/biases: full-extent blocks, constant block index every grid step
    # -> VMEM-resident across the batch loop (DMA'd once).
    resident = lambda a: pl.BlockSpec(a.shape, lambda i: (0,) * a.ndim)

    out = pl.pallas_call(
        mlp_kernel,
        out_shape=jax.ShapeDtypeStruct((Bp, OUT_DIM), jnp.float32),
        grid=(n_tiles,),
        in_specs=[
            pl.BlockSpec((tb, IN_DIM), lambda i: (i, 0)),  # x: batch-tiled
            resident(w1), resident(b1),
            resident(w2), resident(b2),
            resident(w3), resident(b3),
        ],
        out_specs=pl.BlockSpec((tb, OUT_DIM), lambda i: (i, 0)),
        compiler_params=pltpu.CompilerParams(
            dimension_semantics=("parallel",),   # shard batch over v7x's 2 TCs
            vmem_limit_bytes=32 << 20,           # right-sized (< v7x's 64 MiB)
        ),
    )(x_p, w1, b1, w2, b2, w3, b3)

    return out if Bp == B else out[:B]


def init_params(key):
    # Deterministic init mimicking nn.Linear's uniform(-1/sqrt(fan_in), ...).
    ks = jax.random.split(key, 6)

    def linear(kw, kb, fan_in, fan_out):
        bound = 1.0 / jnp.sqrt(fan_in)
        w = jax.random.uniform(kw, (fan_in, fan_out), jnp.float32, -bound, bound)
        b = jax.random.uniform(kb, (1, fan_out), jnp.float32, -bound, bound)
        return w, b

    w1, b1 = linear(ks[0], ks[1], IN_DIM, H1)
    w2, b2 = linear(ks[2], ks[3], H1, H2)
    w3, b3 = linear(ks[4], ks[5], H2, OUT_DIM)
    return w1, b1, w2, b2, w3, b3


def reference_forward(x, w1, b1, w2, b2, w3, b3):
    h1 = jnp.maximum(x @ w1 + b1, 0.0)
    h2 = jnp.maximum(h1 @ w2 + b2, 0.0)
    return h2 @ w3 + b3


if __name__ == "__main__":
    key = jax.random.PRNGKey(0)
    k_x, k_p, k_x2 = jax.random.split(key, 3)
    params = init_params(k_p)

    # Small primary case (single grid step, no padding).
    B = 8
    x = jax.random.normal(k_x, (B, IN_DIM), jnp.float32)
    out = jax.block_until_ready(mlp_forward(x, *params))
    ref = reference_forward(x, *params)
    assert out.shape == (B, OUT_DIM)
    # All-f32 path; tolerance covers TPU default-precision matmul in the ref.
    assert jnp.allclose(out, ref, atol=1e-2, rtol=1e-2)

    # Secondary case: exercises batch padding + 2-step "parallel" grid.
    B2 = 600
    x2 = jax.random.normal(k_x2, (B2, IN_DIM), jnp.float32)
    out2 = jax.block_until_ready(mlp_forward(x2, *params))
    ref2 = reference_forward(x2, *params)
    assert out2.shape == (B2, OUT_DIM)
    assert jnp.allclose(out2, ref2, atol=1e-2, rtol=1e-2)

    print("KERNEL_OK")
</pallas_src>

<mosaic_0001>
module attributes {stable_mosaic.version = 11 : i64} {
  func.func @mlp_kernel(%arg0: i32, %arg1: memref<8x96xf32, #tpu.memory_space<vmem>>, %arg2: memref<96x128xf32, #tpu.memory_space<vmem>>, %arg3: memref<1x128xf32, #tpu.memory_space<vmem>>, %arg4: memref<128x64xf32, #tpu.memory_space<vmem>>, %arg5: memref<1x64xf32, #tpu.memory_space<vmem>>, %arg6: memref<64x13xf32, #tpu.memory_space<vmem>>, %arg7: memref<1x13xf32, #tpu.memory_space<vmem>>, %arg8: memref<8x13xf32, #tpu.memory_space<vmem>>) attributes {dimension_semantics = [#tpu.dimension_semantics<parallel>], iteration_bounds = array<i64: 1>, scalar_prefetch = 0 : i64, scratch_operands = 0 : i64, tpu.core_type = #tpu.core_type<tc>, window_params = [{transform_indices = @transform_0, window_bounds = array<i64: 8, 96>}, {pipeline_mode = #tpu.pipeline_mode<synchronous>, transform_indices = @transform_1, window_bounds = array<i64: 96, 128>}, {pipeline_mode = #tpu.pipeline_mode<synchronous>, transform_indices = @transform_2, window_bounds = array<i64: 1, 128>}, {pipeline_mode = #tpu.pipeline_mode<synchronous>, transform_indices = @transform_3, window_bounds = array<i64: 128, 64>}, {pipeline_mode = #tpu.pipeline_mode<synchronous>, transform_indices = @transform_4, window_bounds = array<i64: 1, 64>}, {pipeline_mode = #tpu.pipeline_mode<synchronous>, transform_indices = @transform_5, window_bounds = array<i64: 64, 13>}, {pipeline_mode = #tpu.pipeline_mode<synchronous>, transform_indices = @transform_6, window_bounds = array<i64: 1, 13>}, {transform_indices = @transform_7, window_bounds = array<i64: 8, 13>}]} {
    %c0 = arith.constant 0 : index
    %c0_0 = arith.constant 0 : index
    %0 = vector.load %arg1[%c0, %c0_0] : memref<8x96xf32, #tpu.memory_space<vmem>>, vector<8x96xf32>
    %c0_1 = arith.constant 0 : index
    %c0_2 = arith.constant 0 : index
    %1 = vector.load %arg2[%c0_1, %c0_2] : memref<96x128xf32, #tpu.memory_space<vmem>>, vector<96x128xf32>
    %cst = arith.constant dense<0.000000e+00> : vector<8x128xf32>
    %2 = tpu.matmul %0, %1, %cst {dimension_numbers = #tpu.dot_dimension_numbers<[1], [0], [0], [1], [0, 0, 1, 1], [], []>} : vector<8x96xf32>, vector<96x128xf32>, vector<8x128xf32> -> vector<8x128xf32>
    %c0_3 = arith.constant 0 : index
    %c0_4 = arith.constant 0 : index
    %3 = vector.load %arg3[%c0_3, %c0_4] : memref<1x128xf32, #tpu.memory_space<vmem>>, vector<1x128xf32>
    %4 = vector.broadcast %3 : vector<1x128xf32> to vector<8x128xf32>
    %5 = arith.addf %2, %4 : vector<8x128xf32>
    %cst_5 = arith.constant 0.000000e+00 : f32
    %6 = vector.broadcast %cst_5 : f32 to vector<8x128xf32>
    %7 = arith.maximumf %5, %6 : vector<8x128xf32>
    %c0_6 = arith.constant 0 : index
    %c0_7 = arith.constant 0 : index
    %8 = vector.load %arg4[%c0_6, %c0_7] : memref<128x64xf32, #tpu.memory_space<vmem>>, vector<128x64xf32>
    %cst_8 = arith.constant dense<0.000000e+00> : vector<8x64xf32>
    %9 = tpu.matmul %7, %8, %cst_8 {dimension_numbers = #tpu.dot_dimension_numbers<[1], [0], [0], [1], [0, 0, 1, 1], [], []>} : vector<8x128xf32>, vector<128x64xf32>, vector<8x64xf32> -> vector<8x64xf32>
    %c0_9 = arith.constant 0 : index
    %c0_10 = arith.constant 0 : index
    %10 = vector.load %arg5[%c0_9, %c0_10] : memref<1x64xf32, #tpu.memory_space<vmem>>, vector<1x64xf32>
    %11 = vector.broadcast %10 : vector<1x64xf32> to vector<8x64xf32>
    %12 = arith.addf %9, %11 : vector<8x64xf32>
    %cst_11 = arith.constant 0.000000e+00 : f32
    %13 = vector.broadcast %cst_11 : f32 to vector<8x64xf32>
    %14 = arith.maximumf %12, %13 : vector<8x64xf32>
    %c0_12 = arith.constant 0 : index
    %c0_13 = arith.constant 0 : index
    %15 = vector.load %arg6[%c0_12, %c0_13] : memref<64x13xf32, #tpu.memory_space<vmem>>, vector<64x13xf32>
    %cst_14 = arith.constant dense<0.000000e+00> : vector<8x13xf32>
    %16 = tpu.matmul %14, %15, %cst_14 {dimension_numbers = #tpu.dot_dimension_numbers<[1], [0], [0], [1], [0, 0, 1, 1], [], []>} : vector<8x64xf32>, vector<64x13xf32>, vector<8x13xf32> -> vector<8x13xf32>
    %c0_15 = arith.constant 0 : index
    %c0_16 = arith.constant 0 : index
    %17 = vector.load %arg7[%c0_15, %c0_16] : memref<1x13xf32, #tpu.memory_space<vmem>>, vector<1x13xf32>
    %18 = vector.broadcast %17 : vector<1x13xf32> to vector<8x13xf32>
    %19 = arith.addf %16, %18 : vector<8x13xf32>
    %c0_17 = arith.constant 0 : index
    %c0_18 = arith.constant 0 : index
    %20 = vector.load %arg8[%c0_17, %c0_18] : memref<8x13xf32, #tpu.memory_space<vmem>>, vector<8x13xf32>
    tpu.vector_store %arg8[%c0_17, %c0_18], %19 {strides = array<i32>} : memref<8x13xf32, #tpu.memory_space<vmem>>, vector<8x13xf32>,
    return
  }
  func.func @transform_0(%arg0: i32) -> (i32, i32) {
    %c0_i32 = arith.constant 0 : i32
    %c0_i32_0 = arith.constant 0 : i32
    return %arg0, %c0_i32 : i32, i32
  }
  func.func @transform_1(%arg0: i32) -> (i32, i32) {
    %c0_i32 = arith.constant 0 : i32
    %c0_i32_0 = arith.constant 0 : i32
    %c0_i32_1 = arith.constant 0 : i32
    return %c0_i32, %c0_i32_0 : i32, i32
  }
  func.func @transform_2(%arg0: i32) -> (i32, i32) {
    %c0_i32 = arith.constant 0 : i32
    %c0_i32_0 = arith.constant 0 : i32
    %c0_i32_1 = arith.constant 0 : i32
    return %c0_i32, %c0_i32_0 : i32, i32
  }
  func.func @transform_3(%arg0: i32) -> (i32, i32) {
    %c0_i32 = arith.constant 0 : i32
    %c0_i32_0 = arith.constant 0 : i32
    %c0_i32_1 = arith.constant 0 : i32
    return %c0_i32, %c0_i32_0 : i32, i32
  }
  func.func @transform_4(%arg0: i32) -> (i32, i32) {
    %c0_i32 = arith.constant 0 : i32
    %c0_i32_0 = arith.constant 0 : i32
    %c0_i32_1 = arith.constant 0 : i32
    return %c0_i32, %c0_i32_0 : i32, i32
  }
  func.func @transform_5(%arg0: i32) -> (i32, i32) {
    %c0_i32 = arith.constant 0 : i32
    %c0_i32_0 = arith.constant 0 : i32
    %c0_i32_1 = arith.constant 0 : i32
    return %c0_i32, %c0_i32_0 : i32, i32
  }
  func.func @transform_6(%arg0: i32) -> (i32, i32) {
    %c0_i32 = arith.constant 0 : i32
    %c0_i32_0 = arith.constant 0 : i32
    %c0_i32_1 = arith.constant 0 : i32
    return %c0_i32, %c0_i32_0 : i32, i32
  }
  func.func @transform_7(%arg0: i32) -> (i32, i32) {
    %c0_i32 = arith.constant 0 : i32
    %c0_i32_0 = arith.constant 0 : i32
    return %arg0, %c0_i32 : i32, i32
  }
}

</mosaic_0001>

<bundles_post_ra>
// kernel: tpu_custom_call.1
= control target key start
LH: loop header
LB: loop body
LE: loop exit
PB: predicated region body
PF: predicated region fallthrough
CT: control target
= control target key end

     0   :  { %v528_v3 = vmov 0.0|0.0   ;;  %vm529_vm0 = vmmov 0   ;;  %v530_v6 = vmov 0.0   ;;  %s728_s0 = inlined_call_operand.vmem [shape: f32[8,96], index: 0, kind: input, shape index: {}]   ;;  %s729_s1 = inlined_call_operand.vmem [shape: f32[96,128], index: 1, kind: input, shape index: {}]   ;;  %s730_s2 = inlined_call_operand.vmem [shape: f32[1,128], index: 2, kind: input, shape index: {}]   ;;  %s731_s3 = inlined_call_operand.vmem [shape: f32[128,64], index: 3, kind: input, shape index: {}]   ;;  %s732_s4 = inlined_call_operand.vmem [shape: f32[1,64], index: 4, kind: input, shape index: {}]   ;;  %s733_s5 = inlined_call_operand.vmem [shape: f32[64,13], index: 5, kind: input, shape index: {}]   ;;  %s734_s6 = inlined_call_operand.vmem [shape: f32[1,13], index: 6, kind: input, shape index: {}]   ;;  %s735_s7 = inlined_call_operand.hbm [shape: f32[8,13], index: 7, kind: output, shape index: {}]  }
   0x1   :  { %v28_v0 = vld [vmem:[%s729_s1] sm:$0xff]  ;;  %v29_v1 = vld [vmem:[%s729_s1 + $0x8] sm:$0xff]  ;;  %v30_v2 = vld [vmem:[%s729_s1 + $0x10] sm:$0xff]  ;;  %446 = vmatprep.subr.bf16.mxu0 %v528_v3  ;;  %389 = vmatprep.mubr.msk.f32.mxu0 %vm529_vm0, %v530_v6 }
   0x2   :  { %v447_v4 = vpack.c.bf16 %v29_v1, %v28_v0  ;;  %v31_v5 = vld [vmem:[%s729_s1 + $0x18] sm:$0xff]  ;;  %464 = vmatprep.subr.bf16.mxu1 %v528_v3  ;;  %424 = vmatprep.mubr.msk.f32.mxu1 %vm529_vm0, %v530_v6  ;;  %v32_v8 = vld [vmem:[%s729_s1 + $0x20] sm:$0xff]  ;;  %v33_v9 = vld [vmem:[%s729_s1 + $0x28] sm:$0xff] }
   0x3   :  { %v450_v7 = vpack.c.bf16 %v31_v5, %v30_v2  ;;  %v122_v10 = vld [vmem:[%s731_s3] sm:$0xff]  ;;  %v123_v11 = vld [vmem:[%s731_s3 + $0x8] sm:$0xff]  ;;  %v124_v13 = vld [vmem:[%s731_s3 + $0x10] sm:$0xff]  ;;  %v453_v15 = vpack.c.bf16 %v33_v9, %v32_v8 }
   0x4   :  { %448 = vmatpush3.bf16.msra.mxu0 %v447_v4  ;;  %v465_v12 = vpack.c.bf16 %v123_v11, %v122_v10  ;;  %v125_v14 = vld [vmem:[%s731_s3 + $0x18] sm:$0xff]  ;;  %v34_v16 = vld [vmem:[%s729_s1 + $0x30] sm:$0xff]  ;;  %v126_v19 = vld [vmem:[%s731_s3 + $0x20] sm:$0xff] }
   0x5   :  { %449 = vmatprep.subr.bf16.mxu0 %v528_v3  ;;  %v468_v17 = vpack.c.bf16 %v125_v14, %v124_v13  ;;  %v35_v18 = vld [vmem:[%s729_s1 + $0x38] sm:$0xff]  ;;  %v127_v20 = vld [vmem:[%s731_s3 + $0x28] sm:$0xff] }
   0x6   :  { %466 = vmatpush3.bf16.msra.mxu1 %v465_v12 }
   0x7   :  { %467 = vmatprep.subr.bf16.mxu1 %v528_v3 }
   0x8   :  { %451 = vmatpush3.bf16.msra.mxu0 %v450_v7 }
   0x9   :  { %452 = vmatprep.subr.bf16.mxu0 %v528_v3 }
   0xa   :  { %12 = vsyncpa [#allocation3], 0  ;;  %v456_v21 = vpack.c.bf16 %v35_v18, %v34_v16  ;;  %v36_v22 = vld [vmem:[%s729_s1 + $0x40] sm:$0xff]  ;;  %469 = vmatpush3.bf16.msra.mxu1 %v468_v17  ;;  %v471_v23 = vpack.c.bf16 %v127_v20, %v126_v19  ;;  %v37_v24 = vld [vmem:[%s729_s1 + $0x48] sm:$0xff]  ;;  %vm47_vm1 = vcmask 785408   ;;  %vm231_vm2 = vcmask 523264  }
   0xb   :  { %470 = vmatprep.subr.bf16.mxu1 %v528_v3  ;;  %v128_v25 = vld [vmem:[%s731_s3 + $0x30] sm:$0xff]  ;;  %v129_v26 = vld [vmem:[%s731_s3 + $0x38] sm:$0xff]  ;;  %v459_v27 = vpack.c.bf16 %v37_v24, %v36_v22  ;;  %v130_v31 = vld [vmem:[%s731_s3 + $0x40] sm:$0xff]  ;;  %s531_s30 = smov [#allocation2]   ;;  %vm305_vm3 = vcmask 105472  }
   0xc   :  { %454 = vmatpush3.bf16.msra.mxu0 %v453_v15  ;;  %v38_v28 = vld [vmem:[%s729_s1 + $0x50] sm:$0xff]  ;;  %v474_v29 = vpack.c.bf16 %v129_v26, %v128_v25  ;;  %v39_v30 = vld [vmem:[%s729_s1 + $0x58] sm:$0xff]  ;;  %v131_v32 = vld [vmem:[%s731_s3 + $0x48] sm:$0xff] }
   0xd   :  { %455 = vmatprep.subr.bf16.mxu0 %v528_v3  ;;  %v462_v33 = vpack.c.bf16 %v39_v30, %v38_v28  ;;  %v477_v34 = vpack.c.bf16 %v131_v32, %v130_v31  ;;  %v132_v35 = vld [vmem:[%s731_s3 + $0x50] sm:$0xff]  ;;  %v133_v36 = vld [vmem:[%s731_s3 + $0x58] sm:$0xff]  ;;  %v27_v37 = vld [vmem:[%s728_s0] sm:$0xff]  ;;  %s313_s0 = sshll.u32 %s531_s30, 4  ;;  %s314_s0 = int_to_ptr.vmem [resolvable:$true] %s313_s0 }
   0xe   :  { %472 = vmatpush3.bf16.msra.mxu1 %v471_v23  ;;  %v480_v38 = vpack.c.bf16 %v133_v36, %v132_v35  ;;  %v134_v39 = vld [vmem:[%s731_s3 + $0x60] sm:$0xff]  ;;  %v135_v40 = vld [vmem:[%s731_s3 + $0x68] sm:$0xff]  ;;  %v136_v42 = vld [vmem:[%s731_s3 + $0x70] sm:$0xff]  ;;  %p509_p1 = scmp.lt.s32.totalorder %s314_s0, %s314_s0 }
   0xf   :  { %473 = vmatprep.subr.bf16.mxu1 %v528_v3  ;;  %v483_v41 = vpack.c.bf16 %v135_v40, %v134_v39  ;;  %v137_v43 = vld [vmem:[%s731_s3 + $0x78] sm:$0xff]  ;;  %v216_v45 = vld [vmem:[%s733_s5] sm:$0xff]  ;;  %v217_v46 = vld [vmem:[%s733_s5 + $0x8] sm:$0xff] }
  0x10   :  { %457 = vmatpush3.bf16.msra.mxu0 %v456_v21  ;;  %v486_v44 = vpack.c.bf16 %v137_v43, %v136_v42  ;;  %v218_v47 = vld [vmem:[%s733_s5 + $0x10] sm:$0xff]  ;;  %v489_v48 = vpack.c.bf16 %v217_v46, %v216_v45  ;;  %v219_v49 = vld [vmem:[%s733_s5 + $0x18] sm:$0xff]  ;;  %v220_v51 = vld [vmem:[%s733_s5 + $0x20] sm:$0xff] }
  0x11   :  { %458 = vmatprep.subr.bf16.mxu0 %v528_v3  ;;  %v492_v50 = vpack.c.bf16 %v219_v49, %v218_v47  ;;  %v221_v52 = vld [vmem:[%s733_s5 + $0x28] sm:$0xff]  ;;  %v321_v54 = vld [vmem:[%s730_s2] ss:$0 sm:$0xff]  ;;  %v222_v59 = vld [vmem:[%s733_s5 + $0x30] sm:$0xff] }
  0x12   :  { %475 = vmatpush3.bf16.msra.mxu1 %v474_v29  ;;  %v495_v53 = vpack.c.bf16 %v221_v52, %v220_v51  ;;  %v223_v60 = vld [vmem:[%s733_s5 + $0x38] sm:$0xff]  ;;  %v323_v62 = vld [vmem:[%s732_s4] ss:$0 sm:$0xff]  ;;  %s504_s5 = scalar_lea.vmem %s314_s0, 128 }
  0x13   :  { %476 = vmatprep.subr.bf16.mxu1 %v528_v3  ;;  %v498_v61 = vpack.c.bf16 %v223_v60, %v222_v59  ;;  %p505_p0 = scmp.ne.s32.totalorder %s314_s0, %s504_s5  ;;  %p510_p2 = scmp.lt.s32.totalorder %s504_s5, %s504_s5 }
  0x14   :  { %460 = vmatpush3.bf16.msra.mxu0 %v459_v27 }
  0x15   :  { %461 = vmatprep.subr.bf16.mxu0 %v528_v3  ;;  %p511_p3 = por %p510_p2, %p509_p1 }
  0x16   :  { %478 = vmatpush3.bf16.msra.mxu1 %v477_v34 }
  0x17   :  { %479 = vmatprep.subr.bf16.mxu1 %v528_v3  ;;  %p512_p4 = pnand %p511_p3, %p505_p0 }
  0x18   :  { %463 = vmatpush3.bf16.msra.mxu0 %v462_v33 }
  0x19   :  { %488 = vmatprep.subr.bf16.mxu0 %v528_v3 }
  0x1a   :  { %481 = vmatpush3.bf16.msra.mxu1 %v480_v38 }
  0x1b   :  { %390 = vmatmul.mubr.msk.f32.vlgmr.msra.gmra.mrb[0].mxu0 %vm47_vm1, %v27_v37  ;;  %482 = vmatprep.subr.bf16.mxu1 %v528_v3 }
  0x1c   :  { %443 = vmatprep.mubr.msk.f32.mxu0 %vm529_vm0, %v530_v6  ;;  %490 = vmatpush3.bf16.msra.mxu0 %v489_v48 }
  0x1d   :  { %491 = vmatprep.subr.bf16.mxu0 %v528_v3 }
  0x1e   :  { %484 = vmatpush3.bf16.msra.mxu1 %v483_v41 }
  0x1f   :  { %485 = vmatprep.subr.bf16.mxu1 %v528_v3 }
  0x20   :  { %493 = vmatpush3.bf16.msra.mxu0 %v492_v50 }
  0x21   :  { %494 = vmatprep.subr.bf16.mxu0 %v528_v3 }
  0x22   :  { %487 = vmatpush3.bf16.msra.mxu1 %v486_v44 }
  0x24   :  { %496 = vmatpush3.bf16.msra.mxu0 %v495_v53 }
  0x25   :  { %497 = vmatprep.subr.bf16.mxu0 %v528_v3  ;;  %v324_v3 = vld [vmem:[%s734_s6] ss:$0 sm:$0xff] }
  0x28   :  { %499 = vmatpush3.bf16.msra.mxu0 %v498_v61 }
  0xee   :  { %v117_v55 = vpop.f32.mrb[0].mxu0 }
  0xef   :  { %v118_v56 = vadd.f32 %v321_v54, %v117_v55  ;;  %v391_v57 = vpop.f32.mrb[1].mxu0 }
  0xf1   :  { %v121_v58 = vmax.f32 %v118_v56, 0.0 }
  0xf3   :  { %425 = vmatmul.mubr.f32.vlgmr.msra.gmra.mrb[0].mxu1 %v121_v58 }
 0x1c6   :  { %v211_v63 = vpop.f32.mrb[0].mxu1 }
 0x1c7   :  { %v212_v0 = vadd.f32 %v323_v62, %v211_v63  ;;  %v426_v1 = vpop.f32.mrb[1].mxu1 }
 0x1c9   :  { %v215_v2 = vmax.f32 %v212_v0, 0.0 }
 0x1cb   :  { %444 = vmatmul.mubr.msk.f32.vlgmr.msra.gmra.mrb[2].mxu0 %vm231_vm2, %v215_v2 }
 0x29e   :  { %v301_v4 = vpop.f32.mrb[2].mxu0 }
 0x29f   :  { %v302_v5 = vadd.f32 %v324_v3, %v301_v4  ;;  %v445_v6 = vpop.f32.mrb[3].mxu0 }
 0x2a1   :  { %306 = vst.msk [vmem:[#allocation2] sm:$0xff] %vm305_vm3, %v302_v5 }
 0x2a2   :  { %515 = shalt.err (!%p512_p4)
}
 0x2a3   :  { %s516_s9 = scalar_lea.hbm %s735_s7, 128 }
 0x2a4   :  { %p517_p5 = scmp.ne.s32.totalorder %s735_s7, %s516_s9  ;;  %p520_p6 = scmp.lt.u32.totalorder %s516_s9, %s735_s7 }
 0x2a6   :  { %p522_p7 = pnand %p520_p6, %p517_p5 }
 0x2a8   :  { %525 = shalt.err (!%p522_p7)
}
 0x2a9   :  { %316 = dma.vmem_to_hbm [thread:$0]  %s314_s0, 128, %s735_s7, [#allocation3]  }
 0x2aa   :  { %526 = dma.done.wait [#allocation3], 128  }
 0x2ab   :  { %527 = vsyncadd [#allocation3], 4294967168 }
 0x2ac   :  { %320 = vsyncpa [#allocation3], 1 }

</bundles_post_ra>
